<compile_context>
chip_gen: v6e
topology: v6e:2x2x1
jax: 0.10.0
libtpu: 0.0.40
codegen_flags: <defaults>
</compile_context>

<pallas_src>
import functools

import jax
import jax.numpy as jnp
import numpy as np
from jax.experimental import pallas as pl
from jax.experimental.pallas import tpu as pltpu


def _round_up(x, m):
    return (x + m - 1) // m * m


# --------------------------------------------------------------------------- #
# Fused kernel: all 4 heads, all 3 layers, one T-block per grid step           #
# --------------------------------------------------------------------------- #
def _fused_ppn_kernel(t_ref,       # (TM, 1) f32      timestep column
                      lp_ref,      # (8, 4n) f32      rows: 0=w1, 1=b1, 2=b2
                      w2_ref,      # (4n, 4n) bf16    block-diag layer-2
                      w3_ref,      # (4n, total) bf16 block-diag layer-3
                      b3_ref,      # (1, total) f32   concat layer-3 bias
                      out_ref,     # (TM, total) f32  lane-dense concat output
                      *, gate_off, gate_seg, gate_dim):
    t = t_ref[...]                                   # (TM, 1)
    w1 = lp_ref[0:1, :]                              # (1, 4n)
    b1 = lp_ref[1:2, :]
    b2 = lp_ref[2:3, :]

    # ---- Layer 1, all heads batched along lanes: Linear(1, n) on t ----
    h1 = jnp.tanh(t * w1 + b1)                       # (TM, 4n) f32

    # ---- Layer 2: one block-diagonal bf16 MXU matmul, f32 accumulation ----
    h2 = jnp.tanh(
        jnp.dot(h1.astype(w2_ref.dtype), w2_ref[...],
                preferred_element_type=jnp.float32) + b2)        # (TM, 4n)

    # ---- Layer 3: one block-diagonal bf16 MXU matmul into the concat output --
    o = jnp.dot(h2.astype(w3_ref.dtype), w3_ref[...],
                preferred_element_type=jnp.float32) + b3_ref[...]  # (TM, total)

    # Gate segment (last, 128-aligned): sigmoid, then zero the padded lanes.
    g = jax.nn.sigmoid(o[:, gate_off:gate_off + gate_seg])
    lane = jax.lax.broadcasted_iota(jnp.int32, g.shape, dimension=1)
    g = jnp.where(lane < gate_dim, g, 0.0)

    out_ref[:, :gate_off] = o[:, :gate_off].astype(out_ref.dtype)
    out_ref[:, gate_off:] = g.astype(out_ref.dtype)


def fused_ppn_pallas(t2d, lp, w2_bd, w3_bd, b3_cat, *,
                     gate_off, gate_seg, gate_dim, tm=8):
    """One pallas_call over T-blocks producing the (T, total_out) concat output."""
    T = t2d.shape[0]
    total_out = w3_bd.shape[1]
    n4 = w2_bd.shape[0]

    T_pad = _round_up(max(T, 1), tm)
    if T_pad != T:
        t2d = jnp.pad(t2d, ((0, T_pad - T), (0, 0)))
    grid_t = T_pad // tm

    flops_per_row = (2 * n4                    # layer 1 mul+add
                     + 2 * n4 * n4 + n4        # layer 2 matmul + bias
                     + 2 * n4 * total_out + total_out)  # layer 3 matmul + bias
    transc_per_row = 2 * n4 + gate_seg         # tanh x2 + gate sigmoid
    weight_bytes = sum(int(np.prod(a.shape)) * a.dtype.itemsize
                       for a in (lp, w2_bd, w3_bd, b3_cat))
    bytes_accessed = weight_bytes + T_pad * 4 + T_pad * total_out * 4

    kernel = functools.partial(_fused_ppn_kernel, gate_off=gate_off,
                               gate_seg=gate_seg, gate_dim=gate_dim)

    out = pl.pallas_call(
        kernel,
        out_shape=jax.ShapeDtypeStruct((T_pad, total_out), jnp.float32),
        grid=(grid_t,),
        in_specs=[
            pl.BlockSpec((tm, 1), lambda i: (i, 0)),         # timestep tile
            pl.BlockSpec(lp.shape, lambda i: (0, 0)),        # w1/b1/b2 pack
            pl.BlockSpec(w2_bd.shape, lambda i: (0, 0)),     # block-diag W2
            pl.BlockSpec(w3_bd.shape, lambda i: (0, 0)),     # block-diag W3
            pl.BlockSpec(b3_cat.shape, lambda i: (0, 0)),    # concat b3
        ],
        out_specs=pl.BlockSpec((tm, total_out), lambda i: (i, 0)),
        compiler_params=pltpu.CompilerParams(
            dimension_semantics=("parallel",),
            vmem_limit_bytes=4 * 1024 * 1024),
        cost_estimate=pl.CostEstimate(
            flops=int(flops_per_row * T_pad),
            transcendentals=int(transc_per_row * T_pad),
            bytes_accessed=int(bytes_accessed)),
    )(t2d, lp, w2_bd, w3_bd, b3_cat)
    return out[:T]


# --------------------------------------------------------------------------- #
# Parameter init + module wrapper                                              #
# --------------------------------------------------------------------------- #
def init_mlp_params(key, n_neurons, out_dim, scale=0.1):
    """Synthetic init for Linear(1,n) -> Linear(n,n) -> Linear(n,out), (in,out) layout."""
    k1, k2, k3, k4, k5, k6 = jax.random.split(key, 6)
    w1 = scale * jax.random.normal(k1, (1, n_neurons), jnp.float32)
    b1 = scale * jax.random.normal(k2, (1, n_neurons), jnp.float32)
    w2 = scale * jax.random.normal(k3, (n_neurons, n_neurons), jnp.float32)
    b2 = scale * jax.random.normal(k4, (1, n_neurons), jnp.float32)
    w3 = scale * jax.random.normal(k5, (n_neurons, out_dim), jnp.float32)
    b3 = scale * jax.random.normal(k6, (1, out_dim), jnp.float32)
    return (w1, b1, w2, b2, w3, b3)


class ParameterPredictingNetworkPallas:
    """JAX/Pallas port of ParemeterPredicitingNetwork.forward (single fused kernel)."""

    def __init__(self, z_size, n_neurons, n_functions, hidden_size, key,
                 weights_dtype=jnp.bfloat16):
        self.z_size = z_size
        self.n_neurons = n_neurons
        self.n_functions = n_functions
        self.hidden_size = hidden_size

        # Per-head output dims (same order as the torch module: w_in, w_out, b, gate).
        self.out_dims = (
            n_functions * z_size * hidden_size,
            n_functions * z_size * hidden_size,
            n_functions * hidden_size,
            n_functions,
        )
        # Lane-dense segments: pad each head's output up to a multiple of 128.
        self.seg_sizes = tuple(_round_up(d, 128) for d in self.out_dims)
        self.seg_offsets = tuple(int(x) for x in np.cumsum((0,) + self.seg_sizes[:-1]))
        self.total_out = int(sum(self.seg_sizes))
        self.gate_off = self.seg_offsets[3]
        self.gate_seg = self.seg_sizes[3]

        # Init each head in f32, then cast to the storage dtype (bf16 by default).
        keys = jax.random.split(key, 4)
        heads_f32 = [init_mlp_params(k, n_neurons, d) for k, d in zip(keys, self.out_dims)]
        self.heads_stored = [tuple(p.astype(weights_dtype) for p in h) for h in heads_f32]

        n4 = 4 * n_neurons
        # Small layer-1/2 params packed into ONE f32 (8, 4n) tile:
        #   row 0 = w1 (stacked over heads), row 1 = b1, row 2 = b2, rest zero.
        w1_stack = jnp.concatenate([h[0] for h in self.heads_stored], axis=1)
        b1_stack = jnp.concatenate([h[1] for h in self.heads_stored], axis=1)
        b2_stack = jnp.concatenate([h[3] for h in self.heads_stored], axis=1)
        lp = jnp.zeros((8, n4), jnp.float32)
        lp = lp.at[0, :].set(w1_stack[0].astype(jnp.float32))
        lp = lp.at[1, :].set(b1_stack[0].astype(jnp.float32))
        lp = lp.at[2, :].set(b2_stack[0].astype(jnp.float32))
        self.lp = lp

        # Block-diagonal layer-2: (4n, 4n), bf16.
        self.w2_bd = jax.scipy.linalg.block_diag(
            *[h[2] for h in self.heads_stored]).astype(weights_dtype)

        # Block-diagonal layer-3: (4n, total_out) bf16, columns padded to each
        # head's 128-aligned segment; concat f32 bias (padded lanes = 0).
        w3_blocks, b3_parts = [], []
        for (_, _, _, _, w3, b3), d, s in zip(self.heads_stored, self.out_dims,
                                              self.seg_sizes):
            pad = s - d
            w3_blocks.append(jnp.pad(w3, ((0, 0), (0, pad))))
            b3_parts.append(jnp.pad(b3.astype(jnp.float32), ((0, 0), (0, pad))))
        self.w3_bd = jax.scipy.linalg.block_diag(*w3_blocks).astype(weights_dtype)
        self.b3_cat = jnp.concatenate(b3_parts, axis=1)   # (1, total_out) f32

    # ----- kernel invocation -------------------------------------------------
    def _run(self, t2d, tm=8):
        return fused_ppn_pallas(
            t2d, self.lp, self.w2_bd, self.w3_bd, self.b3_cat,
            gate_off=self.gate_off, gate_seg=self.gate_seg,
            gate_dim=self.out_dims[3], tm=tm)

    def _unpack(self, flat):
        T = flat.shape[0]
        nf, hs, zs = self.n_functions, self.hidden_size, self.z_size
        d_w, d_b, d_g = self.out_dims[0], self.out_dims[2], self.out_dims[3]
        o = self.seg_offsets
        w_in = flat[:, o[0]:o[0] + d_w].reshape(T, nf, hs, zs)
        w_out = flat[:, o[1]:o[1] + d_w].reshape(T, nf, zs, hs)
        b = flat[:, o[2]:o[2] + d_b].reshape(T, nf, hs, 1)
        gate = flat[:, o[3]:o[3] + d_g].reshape(T, nf, 1, 1)
        return w_in, w_out, b, gate

    def __call__(self, t):
        """Matches the torch forward: scalar t -> outputs with leading dim 1."""
        t2d = jnp.asarray(t, jnp.float32).reshape(1, 1)
        return self._unpack(self._run(t2d))

    def forward_batched(self, ts, tm=8):
        """Perf path: (T,) timesteps in one launch; leading dim T on each output."""
        t2d = jnp.asarray(ts, jnp.float32).reshape(-1, 1)
        return self._unpack(self._run(t2d, tm=tm))


# --------------------------------------------------------------------------- #
# Pure-JAX reference mirroring the kernel math (same stored bf16 weights,      #
# bf16 activations into f32-accumulating dots, f32 tanh/sigmoid/bias adds)     #
# --------------------------------------------------------------------------- #
def _mlp_ref(t2d, params, apply_sigmoid=False):
    w1, b1, w2, b2, w3, b3 = params
    w1f, b1f, b2f, b3f = (jnp.asarray(x, jnp.float32) for x in (w1, b1, b2, b3))
    h1 = jnp.tanh(t2d @ w1f + b1f)
    h2 = jnp.tanh(jnp.dot(h1.astype(w2.dtype), w2,
                          preferred_element_type=jnp.float32) + b2f)
    out = jnp.dot(h2.astype(w3.dtype), w3,
                  preferred_element_type=jnp.float32) + b3f
    if apply_sigmoid:
        out = jax.nn.sigmoid(out)
    return out


if __name__ == "__main__":
    # Small shapes consistent with the module.
    z_size, n_neurons, n_functions, hidden_size = 4, 32, 8, 16

    key = jax.random.PRNGKey(0)
    k_model, k_t = jax.random.split(key)
    model = ParameterPredictingNetworkPallas(
        z_size, n_neurons, n_functions, hidden_size, k_model)

    # ------------------ spec path: single scalar t (torch forward) -----------
    t = jax.random.uniform(k_t, (), jnp.float32)
    w_in, w_out, b, gate = model(t)
    jax.block_until_ready((w_in, w_out, b, gate))

    assert w_in.shape == (1, n_functions, hidden_size, z_size)
    assert w_out.shape == (1, n_functions, z_size, hidden_size)
    assert b.shape == (1, n_functions, hidden_size, 1)
    assert gate.shape == (1, n_functions, 1, 1)

    t2 = t.reshape(1, 1)
    ref_w_in = _mlp_ref(t2, model.heads_stored[0]).reshape(1, n_functions, hidden_size, z_size)
    ref_w_out = _mlp_ref(t2, model.heads_stored[1]).reshape(1, n_functions, z_size, hidden_size)
    ref_b = _mlp_ref(t2, model.heads_stored[2]).reshape(1, n_functions, hidden_size, 1)
    ref_gate = _mlp_ref(t2, model.heads_stored[3], apply_sigmoid=True).reshape(1, n_functions, 1, 1)

    assert jnp.allclose(w_in, ref_w_in, atol=2e-4, rtol=2e-3)
    assert jnp.allclose(w_out, ref_w_out, atol=2e-4, rtol=2e-3)
    assert jnp.allclose(b, ref_b, atol=2e-4, rtol=2e-3)
    assert jnp.allclose(gate, ref_gate, atol=2e-4, rtol=2e-3)

    # ------------------ perf path: batched timesteps, multi-block grid -------
    T = 20
    ts = jax.random.uniform(jax.random.PRNGKey(1), (T,), jnp.float32)
    bw_in, bw_out, bb, bgate = model.forward_batched(ts)
    jax.block_until_ready((bw_in, bw_out, bb, bgate))

    assert bw_in.shape == (T, n_functions, hidden_size, z_size)
    assert bgate.shape == (T, n_functions, 1, 1)

    t2d = ts.reshape(-1, 1)
    ref_bw_in = _mlp_ref(t2d, model.heads_stored[0]).reshape(T, n_functions, hidden_size, z_size)
    ref_bw_out = _mlp_ref(t2d, model.heads_stored[1]).reshape(T, n_functions, z_size, hidden_size)
    ref_bb = _mlp_ref(t2d, model.heads_stored[2]).reshape(T, n_functions, hidden_size, 1)
    ref_bgate = _mlp_ref(t2d, model.heads_stored[3], apply_sigmoid=True).reshape(T, n_functions, 1, 1)

    assert jnp.allclose(bw_in, ref_bw_in, atol=2e-4, rtol=2e-3)
    assert jnp.allclose(bw_out, ref_bw_out, atol=2e-4, rtol=2e-3)
    assert jnp.allclose(bb, ref_bb, atol=2e-4, rtol=2e-3)
    assert jnp.allclose(bgate, ref_bgate, atol=2e-4, rtol=2e-3)

    print("KERNEL_OK")
</pallas_src>

<mosaic_0001>
module attributes {stable_mosaic.version = 11 : i64} {
  func.func @_fused_ppn_kernel(%arg0: i32, %arg1: memref<8x1xf32, #tpu.memory_space<vmem>>, %arg2: memref<8x128xf32, #tpu.memory_space<vmem>>, %arg3: memref<128x128xbf16, #tpu.memory_space<vmem>>, %arg4: memref<128x1280xbf16, #tpu.memory_space<vmem>>, %arg5: memref<1x1280xf32, #tpu.memory_space<vmem>>, %arg6: memref<8x1280xf32, #tpu.memory_space<vmem>>) attributes {dimension_semantics = [#tpu.dimension_semantics<parallel>], iteration_bounds = array<i64: 1>, scalar_prefetch = 0 : i64, scratch_operands = 0 : i64, tpu.core_type = #tpu.core_type<tc>, window_params = [{transform_indices = @transform_0, window_bounds = array<i64: 8, 1>}, {pipeline_mode = #tpu.pipeline_mode<synchronous>, transform_indices = @transform_1, window_bounds = array<i64: 8, 128>}, {pipeline_mode = #tpu.pipeline_mode<synchronous>, transform_indices = @transform_2, window_bounds = array<i64: 128, 128>}, {pipeline_mode = #tpu.pipeline_mode<synchronous>, transform_indices = @transform_3, window_bounds = array<i64: 128, 1280>}, {pipeline_mode = #tpu.pipeline_mode<synchronous>, transform_indices = @transform_4, window_bounds = array<i64: 1, 1280>}, {transform_indices = @transform_5, window_bounds = array<i64: 8, 1280>}]} {
    %c0 = arith.constant 0 : index
    %c0_0 = arith.constant 0 : index
    %0 = vector.load %arg1[%c0, %c0_0] : memref<8x1xf32, #tpu.memory_space<vmem>>, vector<8x1xf32>
    %c0_1 = arith.constant 0 : index
    %c0_2 = arith.constant 0 : index
    %1 = vector.load %arg2[%c0_1, %c0_2] : memref<8x128xf32, #tpu.memory_space<vmem>>, vector<1x128xf32>
    %c1 = arith.constant 1 : index
    %c0_3 = arith.constant 0 : index
    %2 = vector.load %arg2[%c1, %c0_3] : memref<8x128xf32, #tpu.memory_space<vmem>>, vector<1x128xf32>
    %c2 = arith.constant 2 : index
    %c0_4 = arith.constant 0 : index
    %3 = vector.load %arg2[%c2, %c0_4] : memref<8x128xf32, #tpu.memory_space<vmem>>, vector<1x128xf32>
    %4 = vector.broadcast %0 : vector<8x1xf32> to vector<8x128xf32>
    %5 = vector.broadcast %1 : vector<1x128xf32> to vector<8x128xf32>
    %6 = arith.mulf %4, %5 : vector<8x128xf32>
    %7 = vector.broadcast %2 : vector<1x128xf32> to vector<8x128xf32>
    %8 = arith.addf %6, %7 : vector<8x128xf32>
    %9 = math.tanh %8 : vector<8x128xf32>
    %10 = arith.truncf %9 : vector<8x128xf32> to vector<8x128xbf16>
    %c0_5 = arith.constant 0 : index
    %c0_6 = arith.constant 0 : index
    %11 = vector.load %arg3[%c0_5, %c0_6] : memref<128x128xbf16, #tpu.memory_space<vmem>>, vector<128x128xbf16>
    %cst = arith.constant dense<0.000000e+00> : vector<8x128xf32>
    %12 = tpu.matmul %10, %11, %cst {dimension_numbers = #tpu.dot_dimension_numbers<[1], [0], [0], [1], [0, 0, 1, 1], [], []>} : vector<8x128xbf16>, vector<128x128xbf16>, vector<8x128xf32> -> vector<8x128xf32>
    %13 = vector.broadcast %3 : vector<1x128xf32> to vector<8x128xf32>
    %14 = arith.addf %12, %13 : vector<8x128xf32>
    %15 = math.tanh %14 : vector<8x128xf32>
    %16 = arith.truncf %15 : vector<8x128xf32> to vector<8x128xbf16>
    %c0_7 = arith.constant 0 : index
    %c0_8 = arith.constant 0 : index
    %17 = vector.load %arg4[%c0_7, %c0_8] : memref<128x1280xbf16, #tpu.memory_space<vmem>>, vector<128x1280xbf16>
    %cst_9 = arith.constant dense<0.000000e+00> : vector<8x1280xf32>
    %18 = tpu.matmul %16, %17, %cst_9 {dimension_numbers = #tpu.dot_dimension_numbers<[1], [0], [0], [1], [0, 0, 1, 1], [], []>} : vector<8x128xbf16>, vector<128x1280xbf16>, vector<8x1280xf32> -> vector<8x1280xf32>
    %c0_10 = arith.constant 0 : index
    %c0_11 = arith.constant 0 : index
    %19 = vector.load %arg5[%c0_10, %c0_11] : memref<1x1280xf32, #tpu.memory_space<vmem>>, vector<1x1280xf32>
    %20 = vector.broadcast %19 : vector<1x1280xf32> to vector<8x1280xf32>
    %21 = arith.addf %18, %20 : vector<8x1280xf32>
    %22 = vector.extract_strided_slice %21 {offsets = [0, 1152], sizes = [8, 128], strides = [1, 1]} : vector<8x1280xf32> to vector<8x128xf32>
    %23 = arith.negf %22 : vector<8x128xf32>
    %24 = math.exp %23 : vector<8x128xf32>
    %cst_12 = arith.constant 1.000000e+00 : f32
    %25 = vector.broadcast %cst_12 : f32 to vector<8x128xf32>
    %26 = arith.addf %25, %24 : vector<8x128xf32>
    %27 = arith.divf %25, %26 : vector<8x128xf32>
    %28 = tpu.iota {dimensions = array<i32: 1>} : vector<8x128xi32>
    %c8_i32 = arith.constant 8 : i32
    %29 = vector.broadcast %c8_i32 : i32 to vector<8x128xi32>
    %30 = arith.cmpi slt, %28, %29 : vector<8x128xi32>
    %cst_13 = arith.constant 0.000000e+00 : f32
    %31 = vector.broadcast %cst_13 : f32 to vector<8x128xf32>
    %32 = arith.select %30, %27, %31 : vector<8x128xi1>, vector<8x128xf32>
    %33 = vector.extract_strided_slice %21 {offsets = [0, 0], sizes = [8, 1152], strides = [1, 1]} : vector<8x1280xf32> to vector<8x1152xf32>
    %c0_14 = arith.constant 0 : index
    %c0_15 = arith.constant 0 : index
    %34 = vector.load %arg6[%c0_14, %c0_15] : memref<8x1280xf32, #tpu.memory_space<vmem>>, vector<8x1152xf32>
    tpu.vector_store %arg6[%c0_14, %c0_15], %33 {strides = array<i32>} : memref<8x1280xf32, #tpu.memory_space<vmem>>, vector<8x1152xf32>,
    %c0_16 = arith.constant 0 : index
    %c1152 = arith.constant 1152 : index
    %35 = vector.load %arg6[%c0_16, %c1152] : memref<8x1280xf32, #tpu.memory_space<vmem>>, vector<8x128xf32>
    tpu.vector_store %arg6[%c0_16, %c1152], %32 {strides = array<i32>} : memref<8x1280xf32, #tpu.memory_space<vmem>>, vector<8x128xf32>,
    return
  }
  func.func @transform_0(%arg0: i32) -> (i32, i32) {
    %c0_i32 = arith.constant 0 : i32
    %c0_i32_0 = arith.constant 0 : i32
    return %arg0, %c0_i32 : i32, i32
  }
  func.func @transform_1(%arg0: i32) -> (i32, i32) {
    %c0_i32 = arith.constant 0 : i32
    %c0_i32_0 = arith.constant 0 : i32
    %c0_i32_1 = arith.constant 0 : i32
    return %c0_i32, %c0_i32_0 : i32, i32
  }
  func.func @transform_2(%arg0: i32) -> (i32, i32) {
    %c0_i32 = arith.constant 0 : i32
    %c0_i32_0 = arith.constant 0 : i32
    %c0_i32_1 = arith.constant 0 : i32
    return %c0_i32, %c0_i32_0 : i32, i32
  }
  func.func @transform_3(%arg0: i32) -> (i32, i32) {
    %c0_i32 = arith.constant 0 : i32
    %c0_i32_0 = arith.constant 0 : i32
    %c0_i32_1 = arith.constant 0 : i32
    return %c0_i32, %c0_i32_0 : i32, i32
  }
  func.func @transform_4(%arg0: i32) -> (i32, i32) {
    %c0_i32 = arith.constant 0 : i32
    %c0_i32_0 = arith.constant 0 : i32
    %c0_i32_1 = arith.constant 0 : i32
    return %c0_i32, %c0_i32_0 : i32, i32
  }
  func.func @transform_5(%arg0: i32) -> (i32, i32) {
    %c0_i32 = arith.constant 0 : i32
    %c0_i32_0 = arith.constant 0 : i32
    return %arg0, %c0_i32 : i32, i32
  }
}

</mosaic_0001>

<bundles_post_ra>
// kernel: tpu_custom_call.1
= control target key start
LH: loop header
LB: loop body
LE: loop exit
PB: predicated region body
PF: predicated region fallthrough
CT: control target
= control target key end

     0   :  { %10 = vsyncpa [#allocation3], 0  ;;  %s1399_s0 = inlined_call_operand.vmem [shape: f32[8,1], index: 0, kind: input, shape index: {}]   ;;  %s1400_s1 = inlined_call_operand.hbm [shape: f32[8,128], index: 1, kind: input, shape index: {}]   ;;  %s1401_s2 = inlined_call_operand.hbm [shape: bf16[128,128], index: 2, kind: input, shape index: {}]   ;;  %s1402_s3 = inlined_call_operand.hbm [shape: bf16[128,1280], index: 3, kind: input, shape index: {}]   ;;  %s1403_s4 = inlined_call_operand.vmem [shape: f32[1,1280], index: 4, kind: input, shape index: {}]   ;;  %s1404_s5 = inlined_call_operand.hbm [shape: f32[8,1280], index: 5, kind: output, shape index: {}]  }
   0x1   :  { %11 = vsyncpa [#allocation6], 0 }
   0x2   :  { %12 = vsyncpa [#allocation4], 0  ;;  %s1322_s18 = smov [#allocation5]  }
   0x3   :  { %s30_s19 = sshll.u32 %s1322_s18, 4  ;;  %s31_s19 = int_to_ptr.vmem [resolvable:$true] %s30_s19 }
   0x4   :  { %s1244_s20 = scalar_lea.vmem %s31_s19, 1024  ;;  %p1249_p1 = scmp.lt.s32.totalorder %s31_s19, %s31_s19 }
   0x5   :  { %p1245_p0 = scmp.ne.s32.totalorder %s31_s19, %s1244_s20  ;;  %p1250_p2 = scmp.lt.s32.totalorder %s1244_s20, %s1244_s20 }
   0x7   :  { %p1251_p3 = por %p1250_p2, %p1249_p1 }
   0x9   :  { %p1252_p4 = pnand %p1251_p3, %p1245_p0 }
   0xb   :  { %1255 = shalt.err (!%p1252_p4)
}
   0xc   :  { %s1323_s21 = smov 64   ;;  %s1324_s22 = smov 4  }
   0xd   :  { %36 = dma.hbm_to_vmem [thread:$0]  %s1401_s2, 1024, %s31_s19, [#allocation6], %s1323_s21, %s1323_s21, %s1324_s22  }
   0xe   :  { %s1325_s25 = smov [#allocation2]   ;;  %s1326_s27 = smov [#allocation7]  }
   0xf   :  { %s21_s26 = sshll.u32 %s1325_s25, 4  ;;  %s42_s28 = sshll.u32 %s1326_s27, 4  ;;  %s22_s26 = int_to_ptr.vmem [resolvable:$true] %s21_s26  ;;  %s43_s28 = int_to_ptr.vmem [resolvable:$true] %s42_s28 }
  0x10   :  { %s1264_s29 = scalar_lea.vmem %s22_s26, 128  ;;  %p1269_p6 = scmp.lt.s32.totalorder %s22_s26, %s22_s26 }
  0x11   :  { %p1265_p5 = scmp.ne.s32.totalorder %s22_s26, %s1264_s29  ;;  %p1270_p7 = scmp.lt.s32.totalorder %s1264_s29, %s1264_s29 }
  0x13   :  { %p1271_p8 = por %p1270_p7, %p1269_p6 }
  0x15   :  { %p1272_p9 = pnand %p1271_p8, %p1265_p5 }
  0x17   :  { %1275 = shalt.err (!%p1272_p9)
}
  0x18   :  { %24 = dma.hbm_to_vmem [thread:$0]  %s1400_s1, 128, %s22_s26, [#allocation3]  }
  0x19   :  { %s1284_s7 = scalar_lea.vmem %s43_s28, 10240  ;;  %p1289_p11 = scmp.lt.s32.totalorder %s43_s28, %s43_s28 }
  0x1a   :  { %p1285_p10 = scmp.ne.s32.totalorder %s43_s28, %s1284_s7  ;;  %p1290_p12 = scmp.lt.s32.totalorder %s1284_s7, %s1284_s7 }
  0x1c   :  { %p1291_p13 = por %p1290_p12, %p1289_p11 }
  0x1e   :  { %p1292_p0 = pnand %p1291_p13, %p1285_p10 }
  0x20   :  { %1295 = shalt.err (!%p1292_p0)
}
  0x21   :  { %s1327_s2 = smov 640   ;;  %s1328_s8 = smov 40  }
  0x22   :  { %48 = dma.hbm_to_vmem [thread:$0]  %s1402_s3, 10240, %s43_s28, [#allocation6], %s1327_s2, %s1327_s2, %s1328_s8  }
  0x23   :  { %1316 = dma.done.wait [#allocation3], 128  }
  0x24   :  { %1317 = vsyncadd [#allocation3], 4294967168 }
  0x25   :  { %1318 = dma.done.wait [#allocation6], 11264  }
  0x26   :  { %1319 = vsyncadd [#allocation6], 4294956032  ;;  %v1329_v0 = vmov 0   ;;  %v1330_v1 = vmov 0.0   ;;  %v61_v2 = vld [vmem:[%s1399_s0] sm:$0xff]  ;;  %v1100_v3 = vld [vmem:[#allocation5 + $0x38] sm:$0xff]  }
  0x27   :  { %1099 = vset.pattern.permute.xlu0 %v1329_v0  ;;  %1068 = vmatprep.subr.bf16.mxu0 %v1330_v1  ;;  %vm1331_vm0 = vmmov 0   ;;  %v1101_v4 = vld [vmem:[#allocation5 + $0x30] sm:$0xff]   ;;  %v1102_v5 = vld [vmem:[#allocation5 + $0x28] sm:$0xff]   ;;  %v1103_v6 = vld [vmem:[#allocation5 + $0x20] sm:$0xff]   ;;  %s1332_s14 = smov [#allocation8]  }
  0x28   :  { %758 = vmatprep.mubr.bf16.mxu1 %v1329_v0  ;;  %67 = vperm.xlu0 %1099, %v61_v2   ;;  %v1104_v7 = vld [vmem:[#allocation5 + $0x18] sm:$0xff]   ;;  %v1114_v10 = vld [vmem:[#allocation7 + $0x1e4] ss:$40 sps:$4 sm:$0xff]   ;;  %v1105_v11 = vld [vmem:[#allocation5 + $0x10] sm:$0xff]   ;;  %s957_s15 = sshll.u32 %s1332_s14, 4  ;;  %s958_s15 = int_to_ptr.vmem [resolvable:$true] %s957_s15 }
  0x29   :  { %1084 = vmatprep.mubr.msk.bf16.mxu0 %vm1331_vm0, %v1330_v1  ;;  %1069 = vmatpush3.bf16.msra.mxu0 %v1100_v3  ;;  %v1108_v8 = vld [vmem:[#allocation7 + $0x234] ss:$40 sps:$4 sm:$0xff]   ;;  %v1113_v9 = vld [vmem:[#allocation7 + $0x230] ss:$40 sps:$4 sm:$0xff]   ;;  %v1119_v12 = vld [vmem:[#allocation7 + $0x1e0] ss:$40 sps:$4 sm:$0xff]   ;;  %p1301_p2 = scmp.lt.s32.totalorder %s958_s15, %s958_s15 }
  0x2a   :  { %1070 = vmatprep.subr.bf16.mxu0 %v1330_v1  ;;  %726 = vmatprep.subr.bf16.mxu1 %v1108_v8  ;;  %v1106_v13 = vld [vmem:[#allocation5 + $0x8] sm:$0xff]   ;;  %v1120_v14 = vld [vmem:[#allocation7 + $0x194] ss:$40 sps:$4 sm:$0xff]   ;;  %v1125_v15 = vld [vmem:[#allocation7 + $0x190] ss:$40 sps:$4 sm:$0xff]  }
  0x2b   :  { %727 = vmatpush1.bf16.msra.mxu1 %v1113_v9  ;;  %v1107_v16 = vld [vmem:[#allocation5] sm:$0xff]   ;;  %v967_v20 = vld [vmem:[#allocation2] ss:$0 sm:$0xff]  ;;  %v968_v21 = vld [vmem:[#allocation2 + $0x1] ss:$0 sm:$0xff] }
  0x2c   :  { %728 = vmatprep.subr.bf16.mxu1 %v1114_v10  ;;  %v1112_v17 = vld [vmem:[#allocation7 + $0x23c] ss:$40 sps:$4 sm:$0xff]   ;;  %v1131_v19 = vld [vmem:[#allocation7 + $0x140] ss:$40 sps:$4 sm:$0xff]   ;;  %v1118_v28 = vld [vmem:[#allocation7 + $0x1ec] ss:$40 sps:$4 sm:$0xff]  }
  0x2d   :  { %1071 = vmatpush3.bf16.msra.mxu0 %v1101_v4  ;;  %v1126_v18 = vld [vmem:[#allocation7 + $0x144] ss:$40 sps:$4 sm:$0xff]   ;;  %v1110_v26 = vld [vmem:[#allocation7 + $0x238] ss:$40 sps:$4 sm:$0xff]   ;;  %v1116_v29 = vld [vmem:[#allocation7 + $0x1e8] ss:$40 sps:$4 sm:$0xff]  }
  0x2e   :  { %1072 = vmatprep.subr.bf16.mxu0 %v1330_v1  ;;  %v1124_v30 = vld [vmem:[#allocation7 + $0x19c] ss:$40 sps:$4 sm:$0xff]   ;;  %v1122_v31 = vld [vmem:[#allocation7 + $0x198] ss:$40 sps:$4 sm:$0xff]   ;;  %v1130_v32 = vld [vmem:[#allocation7 + $0x14c] ss:$40 sps:$4 sm:$0xff]  }
  0x2f   :  { %729 = vmatpush1.bf16.msra.mxu1 %v1119_v12  ;;  %v1128_v33 = vld [vmem:[#allocation7 + $0x148] ss:$40 sps:$4 sm:$0xff]   ;;  %v1132_v34 = vld [vmem:[#allocation7 + $0xf4] ss:$40 sps:$4 sm:$0xff]   ;;  %v1134_v36 = vld [vmem:[#allocation7 + $0xf8] ss:$40 sps:$4 sm:$0xff]  }
  0x30   :  { %730 = vmatprep.subr.bf16.mxu1 %v1120_v14  ;;  %v1136_v35 = vld [vmem:[#allocation7 + $0xfc] ss:$40 sps:$4 sm:$0xff]   ;;  %v1137_v37 = vld [vmem:[#allocation7 + $0xf0] ss:$40 sps:$4 sm:$0xff]   ;;  %v1142_v39 = vld [vmem:[#allocation7 + $0xac] ss:$40 sps:$4 sm:$0xff]  }
  0x31   :  { %1073 = vmatpush3.bf16.msra.mxu0 %v1102_v5  ;;  %v1138_v38 = vld [vmem:[#allocation7 + $0xa4] ss:$40 sps:$4 sm:$0xff]   ;;  %v1140_v40 = vld [vmem:[#allocation7 + $0xa8] ss:$40 sps:$4 sm:$0xff]   ;;  %v1144_v42 = vld [vmem:[#allocation7 + $0x54] ss:$40 sps:$4 sm:$0xff]  }
  0x32   :  { %1074 = vmatprep.subr.bf16.mxu0 %v1330_v1  ;;  %v1143_v41 = vld [vmem:[#allocation7 + $0xa0] ss:$40 sps:$4 sm:$0xff]   ;;  %v1148_v43 = vld [vmem:[#allocation7 + $0x5c] ss:$40 sps:$4 sm:$0xff]   ;;  %v1149_v45 = vld [vmem:[#allocation7 + $0x50] ss:$40 sps:$4 sm:$0xff]  }
  0x33   :  { %731 = vmatpush1.bf16.msra.mxu1 %v1125_v15  ;;  %v1146_v44 = vld [vmem:[#allocation7 + $0x58] ss:$40 sps:$4 sm:$0xff]   ;;  %v1150_v46 = vld [vmem:[#allocation7 + $0x4] ss:$40 sps:$4 sm:$0xff]   ;;  %v1152_v48 = vld [vmem:[#allocation7 + $0x8] ss:$40 sps:$4 sm:$0xff]  }
  0x34   :  { %732 = vmatprep.subr.bf16.mxu1 %v1126_v18  ;;  %v1154_v47 = vld [vmem:[#allocation7 + $0xc] ss:$40 sps:$4 sm:$0xff]   ;;  %v1155_v49 = vld [vmem:[#allocation7] ss:$40 sps:$4 sm:$0xff]   ;;  %v969_v52 = vld [vmem:[#allocation2 + $0x2] ss:$0 sm:$0xff] }
  0x35   :  { %1075 = vmatpush3.bf16.msra.mxu0 %v1103_v6  ;;  %v1158_v50 = vld [vmem:[#allocation7 + $0x244] ss:$40 sps:$4 sm:$0xff]   ;;  %v1156_v59 = vld [vmem:[#allocation7 + $0x240] ss:$40 sps:$4 sm:$0xff]   ;;  %v1164_v62 = vld [vmem:[#allocation7 + $0x1f4] ss:$40 sps:$4 sm:$0xff]  }
  0x36   :  { %1076 = vmatprep.subr.bf16.mxu0 %v1330_v1  ;;  %v1161_v51 = vld [vmem:[#allocation7 + $0x24c] ss:$40 sps:$4 sm:$0xff]   ;;  %v1159_v60 = vld [vmem:[#allocation7 + $0x248] ss:$40 sps:$4 sm:$0xff]   ;;  %v1167_v63 = vld [vmem:[#allocation7 + $0x1fc] ss:$40 sps:$4 sm:$0xff]  }
  0x37   :  { %733 = vmatpush1.bf16.msra.mxu1 %v1131_v19  ;;  %v1165_v2 = vld [vmem:[#allocation7 + $0x1f8] ss:$40 sps:$4 sm:$0xff]   ;;  %v1170_v3 = vld [vmem:[#allocation7 + $0x1a4] ss:$40 sps:$4 sm:$0xff]   ;;  %v1171_v6 = vld [vmem:[#allocation7 + $0x1a8] ss:$40 sps:$4 sm:$0xff]  }
  0x38   :  { %734 = vmatprep.subr.bf16.mxu1 %v1132_v34  ;;  %v1173_v4 = vld [vmem:[#allocation7 + $0x1ac] ss:$40 sps:$4 sm:$0xff]   ;;  %v1168_v5 = vld [vmem:[#allocation7 + $0x1a0] ss:$40 sps:$4 sm:$0xff]   ;;  %v1179_v8 = vld [vmem:[#allocation7 + $0x15c] ss:$40 sps:$4 sm:$0xff]  }
  0x39   :  { %1077 = vmatpush3.bf16.msra.mxu0 %v1104_v7  ;;  %v1176_v7 = vld [vmem:[#allocation7 + $0x154] ss:$40 sps:$4 sm:$0xff]   ;;  %v1174_v9 = vld [vmem:[#allocation7 + $0x150] ss:$40 sps:$4 sm:$0xff]   ;;  %v1194_v19 = vld [vmem:[#allocation7 + $0x64] ss:$40 sps:$4 sm:$0xff]  }
  0x3a   :  { %1078 = vmatprep.subr.bf16.mxu0 %v1330_v1  ;;  %v1177_v10 = vld [vmem:[#allocation7 + $0x158] ss:$40 sps:$4 sm:$0xff]   ;;  %v1185_v12 = vld [vmem:[#allocation7 + $0x10c] ss:$40 sps:$4 sm:$0xff]   ;;  %v1183_v14 = vld [vmem:[#allocation7 + $0x108] ss:$40 sps:$4 sm:$0xff]  }
  0x3b   :  { %735 = vmatpush1.bf16.msra.mxu1 %v1137_v37  ;;  %v1188_v15 = vld [vmem:[#allocation7 + $0xb4] ss:$40 sps:$4 sm:$0xff]   ;;  %v1189_v18 = vld [vmem:[#allocation7 + $0xb8] ss:$40 sps:$4 sm:$0xff]   ;;  %v1221_v37 = vld [vmem:[#allocation7 + $0xc4] ss:$40 sps:$4 sm:$0xff]  }
  0x3c   :  { %736 = vmatprep.subr.bf16.mxu1 %v1138_v38  ;;  %v1213_v34 = vld [vmem:[#allocation7 + $0x160] ss:$40 sps:$4 sm:$0xff]  }
  0x3d   :  { %1079 = vmatpush3.bf16.msra.mxu0 %v1105_v11  ;;  %v1182_v11 = vld [vmem:[#allocation7 + $0x104] ss:$40 sps:$4 sm:$0xff]   ;;  %v1219_v38 = vld [vmem:[#allocation7 + $0xc0] ss:$40 sps:$4 sm:$0xff]  }
  0x3e   :  { %1080 = vmatprep.subr.bf16.mxu0 %v1330_v1 }
  0x3f   :  { %737 = vmatpush1.bf16.msra.mxu1 %v1143_v41  ;;  %v1225_v41 = vld [vmem:[#allocation7 + $0x20] ss:$40 sps:$4 sm:$0xff]  }
  0x40   :  { %738 = vmatprep.subr.bf16.mxu1 %v1144_v42  ;;  %v276_v42 = vlaneseq }
  0x41   :  { %1081 = vmatpush3.bf16.msra.mxu0 %v1106_v13  ;;  %v1180_v13 = vld [vmem:[#allocation7 + $0x100] ss:$40 sps:$4 sm:$0xff]  }
  0x42   :  { %1082 = vmatprep.subr.bf16.mxu0 %v1330_v1  ;;  %v1162_v1 = vld [vmem:[#allocation7 + $0x1f0] ss:$40 sps:$4 sm:$0xff]  }
  0x43   :  { %739 = vmatpush1.bf16.msra.mxu1 %v1149_v45 }
  0x44   :  { %740 = vmatprep.subr.bf16.mxu1 %v1150_v46  ;;  %v272_v46 = vld [vmem:[%s1403_s4] sm:$0xff] }
  0x45   :  { %1083 = vmatpush3.bf16.msra.mxu0 %v1107_v16  ;;  %v1191_v16 = vld [vmem:[#allocation7 + $0xbc] ss:$40 sps:$4 sm:$0xff]  }
  0x46   :  { %767 = vmatprep.subr.bf16.mxu0 %v1112_v17  ;;  %v1186_v17 = vld [vmem:[#allocation7 + $0xb0] ss:$40 sps:$4 sm:$0xff]  }
  0x47   :  { %741 = vmatpush1.bf16.msra.mxu1 %v1155_v49 }
  0x48   :  { %808 = vmatprep.subr.bf16.mxu1 %v1158_v50 }
  0xa3   :  { %v68_v22 = vpop.permute.xlu0 %67 }
  0xa4   :  { %v74_v23 = vmul.f32 %v967_v20, %v68_v22  ;;  %v1197_v20 = vld [vmem:[#allocation7 + $0x6c] ss:$40 sps:$4 sm:$0xff]   ;;  %v1195_v22 = vld [vmem:[#allocation7 + $0x68] ss:$40 sps:$4 sm:$0xff]  }
  0xa6   :  { %v79_v24 = vadd.f32 %v968_v21, %v74_v23  ;;  %v1192_v21 = vld [vmem:[#allocation7 + $0x60] ss:$40 sps:$4 sm:$0xff]   ;;  %v1200_v23 = vld [vmem:[#allocation7 + $0x14] ss:$40 sps:$4 sm:$0xff]  }
  0xa8   :  { %1228 = vtanh.f32 %v79_v24  ;;  %v1203_v24 = vld [vmem:[#allocation7 + $0x1c] ss:$40 sps:$4 sm:$0xff]  }
  0xb5   :  { %v1229_v25 = vpop.eup %1228 }
  0xb6   :  { %v81_v27 = vpack.c.bf16 %v1229_v25, %v1229_v25  ;;  %v1198_v25 = vld [vmem:[#allocation7 + $0x10] ss:$40 sps:$4 sm:$0xff]  }
  0xb8   :  { %1085 = vmatmul.mubr.bf16.vlgmr.msra.gmra.mxu0 %v81_v27  ;;  %v1206_v27 = vld [vmem:[#allocation7 + $0x254] ss:$40 sps:$4 sm:$0xff]  }
  0xb9   :  { %768 = vmatpush1.bf16.msra.mxu0 %v1110_v26  ;;  %799 = vmatprep.mubr.bf16.mxu0 %v1329_v0  ;;  %v1201_v26 = vld [vmem:[#allocation7 + $0x18] ss:$40 sps:$4 sm:$0xff]  }
  0xba   :  { %769 = vmatprep.subr.bf16.mxu0 %v1118_v28  ;;  %v1204_v28 = vld [vmem:[#allocation7 + $0x250] ss:$40 sps:$4 sm:$0xff]  }
  0xbd   :  { %770 = vmatpush1.bf16.msra.mxu0 %v1116_v29  ;;  %v1209_v29 = vld [vmem:[#allocation7 + $0x204] ss:$40 sps:$4 sm:$0xff]  }
  0xbe   :  { %771 = vmatprep.subr.bf16.mxu0 %v1124_v30  ;;  %v1207_v30 = vld [vmem:[#allocation7 + $0x200] ss:$40 sps:$4 sm:$0xff]  }
  0xc1   :  { %772 = vmatpush1.bf16.msra.mxu0 %v1122_v31  ;;  %v1212_v31 = vld [vmem:[#allocation7 + $0x1b4] ss:$40 sps:$4 sm:$0xff]  }
  0xc2   :  { %773 = vmatprep.subr.bf16.mxu0 %v1130_v32  ;;  %v1210_v32 = vld [vmem:[#allocation7 + $0x1b0] ss:$40 sps:$4 sm:$0xff]  }
  0xc5   :  { %774 = vmatpush1.bf16.msra.mxu0 %v1128_v33  ;;  %v1215_v33 = vld [vmem:[#allocation7 + $0x164] ss:$40 sps:$4 sm:$0xff]  }
  0xc6   :  { %775 = vmatprep.subr.bf16.mxu0 %v1136_v35  ;;  %v1218_v35 = vld [vmem:[#allocation7 + $0x114] ss:$40 sps:$4 sm:$0xff]  }
  0xc9   :  { %776 = vmatpush1.bf16.msra.mxu0 %v1134_v36  ;;  %v1216_v36 = vld [vmem:[#allocation7 + $0x110] ss:$40 sps:$4 sm:$0xff]  }
  0xca   :  { %777 = vmatprep.subr.bf16.mxu0 %v1142_v39  ;;  %v1224_v39 = vld [vmem:[#allocation7 + $0x74] ss:$40 sps:$4 sm:$0xff]  }
  0xcd   :  { %778 = vmatpush1.bf16.msra.mxu0 %v1140_v40  ;;  %v1227_v40 = vld [vmem:[#allocation7 + $0x24] ss:$40 sps:$4 sm:$0xff]  }
  0xce   :  { %779 = vmatprep.subr.bf16.mxu0 %v1148_v43  ;;  %v277_v43 = vshrl.u32 %v276_v42, 7 }
  0xd0   :  { %v286_v45 = vsub.s32 2, %v277_v43 }
  0xd1   :  { %780 = vmatpush1.bf16.msra.mxu0 %v1146_v44  ;;  %v278_v44 = vsub.s32 0, %v277_v43 }
  0xd2   :  { %781 = vmatprep.subr.bf16.mxu0 %v1154_v47  ;;  %v282_v47 = vsub.s32 1, %v277_v43  ;;  %v287_v50 = vrot.slane %v272_v46, %v286_v45 }
  0xd3   :  { %v279_v49 = vrot.slane %v272_v46, %v278_v44 }
  0xd5   :  { %782 = vmatpush1.bf16.msra.mxu0 %v1152_v48  ;;  %v290_v48 = vsub.s32 3, %v277_v43 }
  0xd6   :  { %849 = vmatprep.subr.bf16.mxu0 %v1161_v51  ;;  %v283_v51 = vrot.slane %v272_v46, %v282_v47 }
 0x178   :  { %v184_v53 = vpop.f32.mrf.mxu0 }
 0x179   :  { %v185_v54 = vadd.f32 %v969_v52, %v184_v53  ;;  %v291_v52 = vrot.slane %v272_v46, %v290_v48 }
 0x17a   :  { %v1086_v55 = vpop.f32.mrf.mxu0 }
 0x17b   :  { %1230 = vtanh.f32 %v185_v54 }
 0x17c   :  { %v187_v56 = vpop.f32.mrf.mxu0 }
 0x17e   :  { %v1087_v57 = vpop.f32.mrf.mxu0 }
 0x188   :  { %v1231_v58 = vpop.eup %1230 }
 0x189   :  { %v1378_v61 = vpack.c.bf16 %v1231_v58, %v1231_v58 }
 0x18b   :  { %759 = vmatmul.mubr.bf16.vlgmr.msra.gmra.mxu1 %v1378_v61  ;;  %800 = vmatmul.mubr.bf16.vlgmr.msra.gmra.mxu0 %v1378_v61 }
 0x18c   :  { %809 = vmatpush1.bf16.msra.mxu1 %v1156_v59  ;;  %850 = vmatpush1.bf16.msra.mxu0 %v1159_v60 }
 0x18d   :  { %810 = vmatprep.subr.bf16.mxu1 %v1164_v62  ;;  %851 = vmatprep.subr.bf16.mxu0 %v1167_v63 }
 0x18e   :  { %840 = vmatprep.mubr.bf16.mxu1 %v1329_v0  ;;  %881 = vmatprep.mubr.bf16.mxu0 %v1329_v0 }
 0x190   :  { %811 = vmatpush1.bf16.msra.mxu1 %v1162_v1  ;;  %852 = vmatpush1.bf16.msra.mxu0 %v1165_v2  ;;  %v294_v2 = vsub.s32 4, %v277_v43 }
 0x191   :  { %812 = vmatprep.subr.bf16.mxu1 %v1170_v3  ;;  %853 = vmatprep.subr.bf16.mxu0 %v1173_v4  ;;  %v302_v3 = vsub.s32 6, %v277_v43  ;;  %v298_v4 = vsub.s32 5, %v277_v43 }
 0x194   :  { %813 = vmatpush1.bf16.msra.mxu1 %v1168_v5  ;;  %854 = vmatpush1.bf16.msra.mxu0 %v1171_v6  ;;  %v306_v5 = vsub.s32 7, %v277_v43  ;;  %v295_v6 = vrot.slane %v272_v46, %v294_v2 }
 0x195   :  { %814 = vmatprep.subr.bf16.mxu1 %v1176_v7  ;;  %855 = vmatprep.subr.bf16.mxu0 %v1179_v8  ;;  %v303_v7 = vrot.slane %v272_v46, %v302_v3  ;;  %v299_v8 = vrot.slane %v272_v46, %v298_v4 }
 0x198   :  { %815 = vmatpush1.bf16.msra.mxu1 %v1174_v9  ;;  %856 = vmatpush1.bf16.msra.mxu0 %v1177_v10  ;;  %v307_v9 = vrot.slane %v272_v46, %v306_v5 }
 0x199   :  { %816 = vmatprep.subr.bf16.mxu1 %v1182_v11  ;;  %857 = vmatprep.subr.bf16.mxu0 %v1185_v12 }
 0x19c   :  { %817 = vmatpush1.bf16.msra.mxu1 %v1180_v13  ;;  %858 = vmatpush1.bf16.msra.mxu0 %v1183_v14 }
 0x19d   :  { %818 = vmatprep.subr.bf16.mxu1 %v1188_v15  ;;  %859 = vmatprep.subr.bf16.mxu0 %v1191_v16 }
 0x1a0   :  { %819 = vmatpush1.bf16.msra.mxu1 %v1186_v17  ;;  %860 = vmatpush1.bf16.msra.mxu0 %v1189_v18 }
 0x1a1   :  { %820 = vmatprep.subr.bf16.mxu1 %v1194_v19  ;;  %861 = vmatprep.subr.bf16.mxu0 %v1197_v20 }
 0x1a4   :  { %821 = vmatpush1.bf16.msra.mxu1 %v1192_v21  ;;  %862 = vmatpush1.bf16.msra.mxu0 %v1195_v22  ;;  %v273_v22 = vld [vmem:[%s1403_s4 + $0x8] sm:$0x3]  ;;  %s1296_s4 = scalar_lea.vmem %s958_s15, 1280 }
 0x1a5   :  { %822 = vmatprep.subr.bf16.mxu1 %v1200_v23  ;;  %863 = vmatprep.subr.bf16.mxu0 %v1203_v24  ;;  %v311_v23 = vrot.slane %v273_v22, %v278_v44  ;;  %v315_v24 = vrot.slane %v273_v22, %v282_v47  ;;  %p1297_p1 = scmp.ne.s32.totalorder %s958_s15, %s1296_s4  ;;  %p1302_p3 = scmp.lt.s32.totalorder %s1296_s4, %s1296_s4 }
 0x1a7   :  { %p1303_p4 = por %p1302_p3, %p1301_p2 }
 0x1a8   :  { %823 = vmatpush1.bf16.msra.mxu1 %v1198_v25  ;;  %864 = vmatpush1.bf16.msra.mxu0 %v1201_v26 }
 0x1a9   :  { %890 = vmatprep.subr.bf16.mxu1 %v1206_v27  ;;  %p1304_p5 = pnand %p1303_p4, %p1297_p1 }
 0x1ab   :  { %841 = vmatmul.mubr.bf16.vlgmr.msra.gmra.mxu1 %v1378_v61  ;;  %882 = vmatmul.mubr.bf16.vlgmr.msra.gmra.mxu0 %v1378_v61 }
 0x1ac   :  { %891 = vmatpush1.bf16.msra.mxu1 %v1204_v28  ;;  %922 = vmatprep.mubr.bf16.mxu1 %v1329_v0  ;;  %v1222_v0 = vld [vmem:[#allocation7 + $0x70] ss:$40 sps:$4 sm:$0xff]  }
 0x1ad   :  { %892 = vmatprep.subr.bf16.mxu1 %v1209_v29 }
 0x1b0   :  { %893 = vmatpush1.bf16.msra.mxu1 %v1207_v30 }
 0x1b1   :  { %894 = vmatprep.subr.bf16.mxu1 %v1212_v31 }
 0x1b4   :  { %895 = vmatpush1.bf16.msra.mxu1 %v1210_v32 }
 0x1b5   :  { %896 = vmatprep.subr.bf16.mxu1 %v1215_v33 }
 0x1b8   :  { %897 = vmatpush1.bf16.msra.mxu1 %v1213_v34  ;;  %v938_v34 = vand.u32 127, %v276_v42 }
 0x1b9   :  { %898 = vmatprep.subr.bf16.mxu1 %v1218_v35 }
 0x1ba   :  { %vm939_vm1 = vcmp.lt.s32.totalorder %v938_v34, 8 }
 0x1bc   :  { %899 = vmatpush1.bf16.msra.mxu1 %v1216_v36 }
 0x1bd   :  { %900 = vmatprep.subr.bf16.mxu1 %v1221_v37 }
 0x1c0   :  { %901 = vmatpush1.bf16.msra.mxu1 %v1219_v38 }
 0x1c1   :  { %902 = vmatprep.subr.bf16.mxu1 %v1224_v39 }
 0x1c4   :  { %903 = vmatpush1.bf16.msra.mxu1 %v1222_v0 }
 0x1c5   :  { %904 = vmatprep.subr.bf16.mxu1 %v1227_v40 }
 0x1c8   :  { %905 = vmatpush1.bf16.msra.mxu1 %v1225_v41 }
 0x1cb   :  { %923 = vmatmul.mubr.bf16.vlgmr.msra.gmra.mxu1 %v1378_v61 }
 0x24b   :  { %v760_v53 = vpop.f32.mrf.mxu1  ;;  %v801_v54 = vpop.f32.mrf.mxu0 }
 0x24c   :  { %v761_v55 = vadd.f32 %v760_v53, %v279_v49  ;;  %v802_v56 = vadd.f32 %v801_v54, %v287_v50 }
 0x24d   :  { %v762_v57 = vpop.f32.mrf.mxu1  ;;  %v803_v58 = vpop.f32.mrf.mxu0 }
 0x24e   :  { %941 = vst [vmem:[#allocation8] sm:$0xff] %v761_v55  ;;  %943 = vst [vmem:[#allocation8 + $0x10] sm:$0xff] %v802_v56  ;;  %v763_v59 = vadd.f32 %v762_v57, %v283_v51  ;;  %v804_v60 = vadd.f32 %v803_v58, %v291_v52 }
 0x24f   :  { %v764_v61 = vpop.f32.mrf.mxu1  ;;  %v805_v62 = vpop.f32.mrf.mxu0 }
 0x250   :  { %942 = vst [vmem:[#allocation8 + $0x8] sm:$0xff] %v763_v59  ;;  %944 = vst [vmem:[#allocation8 + $0x18] sm:$0xff] %v804_v60 }
 0x251   :  { %v765_v63 = vpop.f32.mrf.mxu1  ;;  %v806_v1 = vpop.f32.mrf.mxu0 }
 0x26b   :  { %v842_v10 = vpop.f32.mrf.mxu1  ;;  %v883_v11 = vpop.f32.mrf.mxu0 }
 0x26c   :  { %v843_v12 = vadd.f32 %v842_v10, %v295_v6  ;;  %v884_v13 = vadd.f32 %v883_v11, %v303_v7 }
 0x26d   :  { %v844_v14 = vpop.f32.mrf.mxu1  ;;  %v885_v15 = vpop.f32.mrf.mxu0 }
 0x26e   :  { %945 = vst [vmem:[#allocation8 + $0x20] sm:$0xff] %v843_v12  ;;  %947 = vst [vmem:[#allocation8 + $0x30] sm:$0xff] %v884_v13  ;;  %v845_v16 = vadd.f32 %v844_v14, %v299_v8  ;;  %v886_v17 = vadd.f32 %v885_v15, %v307_v9 }
 0x26f   :  { %v846_v18 = vpop.f32.mrf.mxu1  ;;  %v887_v19 = vpop.f32.mrf.mxu0 }
 0x270   :  { %946 = vst [vmem:[#allocation8 + $0x28] sm:$0xff] %v845_v16  ;;  %948 = vst [vmem:[#allocation8 + $0x38] sm:$0xff] %v886_v17 }
 0x271   :  { %v847_v20 = vpop.f32.mrf.mxu1  ;;  %v888_v21 = vpop.f32.mrf.mxu0 }
 0x28b   :  { %v924_v25 = vpop.f32.mrf.mxu1 }
 0x28c   :  { %v925_v26 = vadd.f32 %v924_v25, %v311_v23 }
 0x28d   :  { %v926_v27 = vpop.f32.mrf.mxu1 }
 0x28e   :  { %949 = vst [vmem:[#allocation8 + $0x40] sm:$0xff] %v925_v26  ;;  %v927_v28 = vadd.f32 %v926_v27, %v315_v24 }
 0x28f   :  { %v928_v29 = vpop.f32.mrf.mxu1 }
 0x290   :  { %v1058_v30 = vmul.f32 -1.442695, %v927_v28 }
 0x291   :  { %v929_v31 = vpop.f32.mrf.mxu1 }
 0x292   :  { %1232 = vpow2.f32 %v1058_v30 }
 0x29f   :  { %v1233_v32 = vpop.eup %1232 }
 0x2a0   :  { %v934_v33 = vadd.f32 1.0, %v1233_v32 }
 0x2a2   :  { %1234 = vrcp.f32 %v934_v33 }
 0x2af   :  { %v1235_v35 = vpop.eup %1234 }
 0x2b0   :  { %v940_v36 = vsel %vm939_vm1, %v1235_v35, 0.0 }
 0x2b1   :  { %950 = vst [vmem:[#allocation8 + $0x48] sm:$0xff] %v940_v36 }
 0x2b2   :  { %1307 = shalt.err (!%p1304_p5)
}
 0x2b3   :  { %960 = dma.vmem_to_hbm [thread:$0]  %s958_s15, 1280, %s1404_s5, [#allocation4]  }
 0x2b4   :  { %1320 = dma.done.wait [#allocation4], 1280  }
 0x2b5   :  { %1321 = vsyncadd [#allocation4], 4294966016 }
 0x2b6   :  { %964 = vsyncpa [#allocation3], 1 }
 0x2b7   :  { %965 = vsyncpa [#allocation6], 1 }
 0x2b8   :  { %966 = vsyncpa [#allocation4], 1 }

</bundles_post_ra>
